<compile_context>
chip_gen: v7x
topology: tpu7x:2x2x1
jax: 0.10.0
libtpu: 0.0.40
codegen_flags: <defaults>
</compile_context>

<pallas_src>
import functools

import jax
import jax.numpy as jnp
from jax.experimental import pallas as pl
from jax.experimental.pallas import tpu as pltpu

EPS = 1e-07
LANE = 128
MAX_BLOCK_ROWS = 512          # 512x128 boxes/step: ~2 MiB inputs, x2 buffers ~4 MiB
VMEM_LIMIT_BYTES = 32 * 1024 * 1024


def _giou_loss_block(b1_ref, b2_ref, eps):
    """Per-box GIoU loss for one (4, block_rows, 128) pair of tiles."""
    x1, y1, x2, y2 = b1_ref[0], b1_ref[1], b1_ref[2], b1_ref[3]        # (R,128)
    x1g, y1g, x2g, y2g = b2_ref[0], b2_ref[1], b2_ref[2], b2_ref[3]    # (R,128)

    # intersection (max(dx,0)*max(dy,0) == masked-where form, fewer VALU ops)
    xkis1 = jnp.maximum(x1, x1g)
    ykis1 = jnp.maximum(y1, y1g)
    xkis2 = jnp.minimum(x2, x2g)
    ykis2 = jnp.minimum(y2, y2g)
    intsctk = jnp.maximum(xkis2 - xkis1, 0.0) * jnp.maximum(ykis2 - ykis1, 0.0)

    # union & IoU
    unionk = (x2 - x1) * (y2 - y1) + (x2g - x1g) * (y2g - y1g) - intsctk
    iouk = intsctk * pl.reciprocal(unionk + eps, approx=False)

    # smallest enclosing box penalty
    xc1 = jnp.minimum(x1, x1g)
    yc1 = jnp.minimum(y1, y1g)
    xc2 = jnp.maximum(x2, x2g)
    yc2 = jnp.maximum(y2, y2g)
    area_c = (xc2 - xc1) * (yc2 - yc1)
    miouk = iouk - (area_c - unionk) * pl.reciprocal(area_c + eps, approx=False)

    return 1.0 - miouk                                                 # (R,128)


def _giou_partial_sum_kernel(n_ref, b1_ref, b2_ref, psum_ref, *, eps, block_rows):
    """'mean'/'sum' path: emit a (8,128) partial sum per grid block."""
    loss = _giou_loss_block(b1_ref, b2_ref, eps)                       # (R,128)

    # mask padded lanes via iota (no mask array read from HBM)
    base = pl.program_id(0) * (block_rows * LANE)
    row_ids = jax.lax.broadcasted_iota(jnp.int32, (block_rows, LANE), 0)
    lane_ids = jax.lax.broadcasted_iota(jnp.int32, (block_rows, LANE), 1)
    flat_idx = base + row_ids * LANE + lane_ids
    loss = jnp.where(flat_idx < n_ref[0], loss, 0.0)

    # fold rows in groups of 8 -> dense (8,128) partial, lane-dense store
    psum_ref[0] = jnp.sum(loss.reshape(block_rows // 8, 8, LANE), axis=0)


def _giou_per_box_kernel(b1_ref, b2_ref, loss_ref, *, eps):
    """'none' path: write the per-box loss tile (padding sliced off outside)."""
    loss_ref[...] = _giou_loss_block(b1_ref, b2_ref, eps)


@functools.partial(jax.jit, static_argnames=("reduction", "eps"))
def giou_loss_pallas(boxes1, boxes2, reduction="mean", eps=EPS):
    """GIoU loss; boxes in XYXY format, shape (N, 4) or (4,)."""
    # TODO(synk): the PyTorch asserts (x2 >= x1).all() are data-dependent and
    # are not reproduced under jit.
    orig_batch_shape = boxes1.shape[:-1]
    b1 = jnp.reshape(boxes1, (-1, 4)).astype(jnp.float32)
    b2 = jnp.reshape(boxes2, (-1, 4)).astype(jnp.float32)
    n = b1.shape[0]

    # tiling over the box axis
    rows_needed = max(1, (n + LANE - 1) // LANE)
    if rows_needed >= MAX_BLOCK_ROWS:
        block_rows = MAX_BLOCK_ROWS
    else:
        block_rows = ((rows_needed + 7) // 8) * 8          # keep sublane-aligned
    padded_rows = ((rows_needed + block_rows - 1) // block_rows) * block_rows
    n_pad = padded_rows * LANE
    grid = padded_rows // block_rows

    def to_tiles(b):
        # pad + transpose fused under this jit; (4, padded_rows, 128) coord-major
        flat = jnp.zeros((4, n_pad), jnp.float32).at[:, :n].set(b.T)
        return flat.reshape(4, padded_rows, LANE)

    b1_t = to_tiles(b1)
    b2_t = to_tiles(b2)

    compiler_params = pltpu.CompilerParams(
        dimension_semantics=("parallel",),
        vmem_limit_bytes=VMEM_LIMIT_BYTES,
    )

    if reduction in ("mean", "sum"):
        kernel = functools.partial(
            _giou_partial_sum_kernel, eps=eps, block_rows=block_rows
        )
        n_arr = jnp.array([n], jnp.int32)
        psums = pl.pallas_call(
            kernel,
            out_shape=jax.ShapeDtypeStruct((grid, 8, LANE), jnp.float32),
            grid_spec=pltpu.PrefetchScalarGridSpec(
                num_scalar_prefetch=1,
                grid=(grid,),
                in_specs=[
                    pl.BlockSpec((4, block_rows, LANE), lambda i, n_ref: (0, i, 0)),
                    pl.BlockSpec((4, block_rows, LANE), lambda i, n_ref: (0, i, 0)),
                ],
                out_specs=pl.BlockSpec((1, 8, LANE), lambda i, n_ref: (i, 0, 0)),
            ),
            compiler_params=compiler_params,
        )(n_arr, b1_t, b2_t)
        total = jnp.sum(psums)
        if reduction == "mean":
            # matches PyTorch spec: empty input -> 0.0 (0.0 * loss.sum())
            return total / jnp.float32(max(n, 1))
        return total

    # reduction == 'none': dense per-box output, padding sliced off afterwards
    kernel = functools.partial(_giou_per_box_kernel, eps=eps)
    loss_tiles = pl.pallas_call(
        kernel,
        out_shape=jax.ShapeDtypeStruct((padded_rows, LANE), jnp.float32),
        grid=(grid,),
        in_specs=[
            pl.BlockSpec((4, block_rows, LANE), lambda i: (0, i, 0)),
            pl.BlockSpec((4, block_rows, LANE), lambda i: (0, i, 0)),
        ],
        out_specs=pl.BlockSpec((block_rows, LANE), lambda i: (i, 0)),
        compiler_params=compiler_params,
    )(b1_t, b2_t)
    loss = loss_tiles.reshape(-1)[:n]
    return loss.reshape(orig_batch_shape)


def _giou_loss_ref(boxes1, boxes2, reduction="mean", eps=EPS):
    """Pure-JAX reference mirroring the PyTorch implementation."""
    x1, y1, x2, y2 = jnp.moveaxis(boxes1, -1, 0)
    x1g, y1g, x2g, y2g = jnp.moveaxis(boxes2, -1, 0)
    xkis1 = jnp.maximum(x1, x1g)
    ykis1 = jnp.maximum(y1, y1g)
    xkis2 = jnp.minimum(x2, x2g)
    ykis2 = jnp.minimum(y2, y2g)
    mask = (ykis2 > ykis1) & (xkis2 > xkis1)
    intsctk = jnp.where(mask, (xkis2 - xkis1) * (ykis2 - ykis1), 0.0)
    unionk = (x2 - x1) * (y2 - y1) + (x2g - x1g) * (y2g - y1g) - intsctk
    iouk = intsctk / (unionk + eps)
    xc1 = jnp.minimum(x1, x1g)
    yc1 = jnp.minimum(y1, y1g)
    xc2 = jnp.maximum(x2, x2g)
    yc2 = jnp.maximum(y2, y2g)
    area_c = (xc2 - xc1) * (yc2 - yc1)
    miouk = iouk - (area_c - unionk) / (area_c + eps)
    loss = 1.0 - miouk
    if reduction == "mean":
        return jnp.mean(loss)
    if reduction == "sum":
        return jnp.sum(loss)
    return loss


class GIoULossPallas:
    """Mirrors the PyTorch GIoULoss module (reduction='mean' by default)."""

    def __init__(self, reduction="mean"):
        self.reduction = reduction

    def __call__(self, pred, target):
        return giou_loss_pallas(pred, target, reduction=self.reduction, eps=EPS)


def _make_boxes(key, n_boxes):
    k1, k2 = jax.random.split(key)
    xy1 = jax.random.uniform(k1, (n_boxes, 2), jnp.float32, 0.0, 10.0)
    wh = jax.random.uniform(k2, (n_boxes, 2), jnp.float32, 0.1, 5.0)
    return jnp.concatenate([xy1, xy1 + wh], axis=-1)  # valid XYXY (N, 4)


if __name__ == "__main__":
    key = jax.random.PRNGKey(0)
    kp, kt, kp2, kt2 = jax.random.split(key, 4)

    # small case (N=8)
    pred = _make_boxes(kp, 8)
    target = _make_boxes(kt, 8)

    module = GIoULossPallas(reduction="mean")
    out_mean = jax.block_until_ready(module(pred, target))
    ref_mean = _giou_loss_ref(pred, target, reduction="mean")
    assert jnp.allclose(out_mean, ref_mean, atol=1e-5, rtol=1e-5), (out_mean, ref_mean)

    out_sum = jax.block_until_ready(giou_loss_pallas(pred, target, reduction="sum"))
    ref_sum = _giou_loss_ref(pred, target, reduction="sum")
    assert jnp.allclose(out_sum, ref_sum, atol=1e-5, rtol=1e-5), (out_sum, ref_sum)

    out_none = jax.block_until_ready(giou_loss_pallas(pred, target, reduction="none"))
    ref_none = _giou_loss_ref(pred, target, reduction="none")
    assert out_none.shape == ref_none.shape
    assert jnp.allclose(out_none, ref_none, atol=1e-5, rtol=1e-5)

    # second small case that exercises multi-row tiles + lane masking (N=257)
    pred2 = _make_boxes(kp2, 257)
    target2 = _make_boxes(kt2, 257)
    out2 = jax.block_until_ready(giou_loss_pallas(pred2, target2, reduction="mean"))
    ref2 = _giou_loss_ref(pred2, target2, reduction="mean")
    assert jnp.allclose(out2, ref2, atol=1e-5, rtol=1e-5), (out2, ref2)

    print("KERNEL_OK")
</pallas_src>

<mosaic_0001>
module attributes {stable_mosaic.version = 11 : i64} {
  func.func @_giou_partial_sum_kernel(%arg0: i32, %arg1: memref<1xi32, #tpu.memory_space<smem>>, %arg2: memref<4x8x128xf32, #tpu.memory_space<vmem>>, %arg3: memref<4x8x128xf32, #tpu.memory_space<vmem>>, %arg4: memref<1x8x128xf32, #tpu.memory_space<vmem>>) attributes {dimension_semantics = [#tpu.dimension_semantics<parallel>], iteration_bounds = array<i64: 1>, scalar_prefetch = 1 : i64, scratch_operands = 0 : i64, tpu.core_type = #tpu.core_type<tc>, window_params = [{transform_indices = @transform_0, window_bounds = array<i64: 4, 8, 128>}, {transform_indices = @transform_1, window_bounds = array<i64: 4, 8, 128>}, {transform_indices = @transform_2, window_bounds = array<i64: 1, 8, 128>}]} {
    %c0 = arith.constant 0 : index
    %c0_0 = arith.constant 0 : index
    %c0_1 = arith.constant 0 : index
    %0 = vector.load %arg2[%c0, %c0_0, %c0_1] : memref<4x8x128xf32, #tpu.memory_space<vmem>>, vector<1x8x128xf32>
    %1 = vector.shape_cast %0 : vector<1x8x128xf32> to vector<8x128xf32>
    %c1 = arith.constant 1 : index
    %c0_2 = arith.constant 0 : index
    %c0_3 = arith.constant 0 : index
    %2 = vector.load %arg2[%c1, %c0_2, %c0_3] : memref<4x8x128xf32, #tpu.memory_space<vmem>>, vector<1x8x128xf32>
    %3 = vector.shape_cast %2 : vector<1x8x128xf32> to vector<8x128xf32>
    %c2 = arith.constant 2 : index
    %c0_4 = arith.constant 0 : index
    %c0_5 = arith.constant 0 : index
    %4 = vector.load %arg2[%c2, %c0_4, %c0_5] : memref<4x8x128xf32, #tpu.memory_space<vmem>>, vector<1x8x128xf32>
    %5 = vector.shape_cast %4 : vector<1x8x128xf32> to vector<8x128xf32>
    %c3 = arith.constant 3 : index
    %c0_6 = arith.constant 0 : index
    %c0_7 = arith.constant 0 : index
    %6 = vector.load %arg2[%c3, %c0_6, %c0_7] : memref<4x8x128xf32, #tpu.memory_space<vmem>>, vector<1x8x128xf32>
    %7 = vector.shape_cast %6 : vector<1x8x128xf32> to vector<8x128xf32>
    %c0_8 = arith.constant 0 : index
    %c0_9 = arith.constant 0 : index
    %c0_10 = arith.constant 0 : index
    %8 = vector.load %arg3[%c0_8, %c0_9, %c0_10] : memref<4x8x128xf32, #tpu.memory_space<vmem>>, vector<1x8x128xf32>
    %9 = vector.shape_cast %8 : vector<1x8x128xf32> to vector<8x128xf32>
    %c1_11 = arith.constant 1 : index
    %c0_12 = arith.constant 0 : index
    %c0_13 = arith.constant 0 : index
    %10 = vector.load %arg3[%c1_11, %c0_12, %c0_13] : memref<4x8x128xf32, #tpu.memory_space<vmem>>, vector<1x8x128xf32>
    %11 = vector.shape_cast %10 : vector<1x8x128xf32> to vector<8x128xf32>
    %c2_14 = arith.constant 2 : index
    %c0_15 = arith.constant 0 : index
    %c0_16 = arith.constant 0 : index
    %12 = vector.load %arg3[%c2_14, %c0_15, %c0_16] : memref<4x8x128xf32, #tpu.memory_space<vmem>>, vector<1x8x128xf32>
    %13 = vector.shape_cast %12 : vector<1x8x128xf32> to vector<8x128xf32>
    %c3_17 = arith.constant 3 : index
    %c0_18 = arith.constant 0 : index
    %c0_19 = arith.constant 0 : index
    %14 = vector.load %arg3[%c3_17, %c0_18, %c0_19] : memref<4x8x128xf32, #tpu.memory_space<vmem>>, vector<1x8x128xf32>
    %15 = vector.shape_cast %14 : vector<1x8x128xf32> to vector<8x128xf32>
    %16 = arith.maximumf %1, %9 : vector<8x128xf32>
    %17 = arith.maximumf %3, %11 : vector<8x128xf32>
    %18 = arith.minimumf %5, %13 : vector<8x128xf32>
    %19 = arith.minimumf %7, %15 : vector<8x128xf32>
    %20 = arith.subf %18, %16 : vector<8x128xf32>
    %cst = arith.constant 0.000000e+00 : f32
    %21 = vector.broadcast %cst : f32 to vector<8x128xf32>
    %22 = arith.maximumf %20, %21 : vector<8x128xf32>
    %23 = arith.subf %19, %17 : vector<8x128xf32>
    %cst_20 = arith.constant 0.000000e+00 : f32
    %24 = vector.broadcast %cst_20 : f32 to vector<8x128xf32>
    %25 = arith.maximumf %23, %24 : vector<8x128xf32>
    %26 = arith.mulf %22, %25 : vector<8x128xf32>
    %27 = arith.subf %5, %1 : vector<8x128xf32>
    %28 = arith.subf %7, %3 : vector<8x128xf32>
    %29 = arith.mulf %27, %28 : vector<8x128xf32>
    %30 = arith.subf %13, %9 : vector<8x128xf32>
    %31 = arith.subf %15, %11 : vector<8x128xf32>
    %32 = arith.mulf %30, %31 : vector<8x128xf32>
    %33 = arith.addf %29, %32 : vector<8x128xf32>
    %34 = arith.subf %33, %26 : vector<8x128xf32>
    %cst_21 = arith.constant 1.000000e-07 : f32
    %35 = vector.broadcast %cst_21 : f32 to vector<8x128xf32>
    %36 = arith.addf %34, %35 : vector<8x128xf32>
    %37 = tpu.reciprocal %36 : vector<8x128xf32> -> vector<8x128xf32>
    %38 = arith.mulf %26, %37 : vector<8x128xf32>
    %39 = arith.minimumf %1, %9 : vector<8x128xf32>
    %40 = arith.minimumf %3, %11 : vector<8x128xf32>
    %41 = arith.maximumf %5, %13 : vector<8x128xf32>
    %42 = arith.maximumf %7, %15 : vector<8x128xf32>
    %43 = arith.subf %41, %39 : vector<8x128xf32>
    %44 = arith.subf %42, %40 : vector<8x128xf32>
    %45 = arith.mulf %43, %44 : vector<8x128xf32>
    %46 = arith.subf %45, %34 : vector<8x128xf32>
    %cst_22 = arith.constant 1.000000e-07 : f32
    %47 = vector.broadcast %cst_22 : f32 to vector<8x128xf32>
    %48 = arith.addf %45, %47 : vector<8x128xf32>
    %49 = tpu.reciprocal %48 : vector<8x128xf32> -> vector<8x128xf32>
    %50 = arith.mulf %46, %49 : vector<8x128xf32>
    %51 = arith.subf %38, %50 : vector<8x128xf32>
    %cst_23 = arith.constant 1.000000e+00 : f32
    %52 = vector.broadcast %cst_23 : f32 to vector<8x128xf32>
    %53 = arith.subf %52, %51 : vector<8x128xf32>
    %c1024_i32 = arith.constant 1024 : i32
    %54 = arith.muli %arg0, %c1024_i32 : i32
    %55 = tpu.iota {dimensions = array<i32: 0>} : vector<8x128xi32>
    %56 = tpu.iota {dimensions = array<i32: 1>} : vector<8x128xi32>
    %c128_i32 = arith.constant 128 : i32
    %57 = vector.broadcast %c128_i32 : i32 to vector<8x128xi32>
    %58 = arith.muli %55, %57 : vector<8x128xi32>
    %59 = vector.broadcast %54 : i32 to vector<8x128xi32>
    %60 = arith.addi %59, %58 : vector<8x128xi32>
    %61 = arith.addi %60, %56 : vector<8x128xi32>
    %c0_24 = arith.constant 0 : index
    %62 = memref.load %arg1[%c0_24] : memref<1xi32, #tpu.memory_space<smem>>
    %63 = vector.broadcast %62 : i32 to vector<8x128xi32>
    %64 = arith.cmpi slt, %61, %63 : vector<8x128xi32>
    %cst_25 = arith.constant 0.000000e+00 : f32
    %65 = vector.broadcast %cst_25 : f32 to vector<8x128xf32>
    %66 = arith.select %64, %53, %65 : vector<8x128xi1>, vector<8x128xf32>
    %67 = vector.shape_cast %66 : vector<8x128xf32> to vector<1x8x128xf32>
    %cst_26 = arith.constant dense<0.000000e+00> : vector<8x128xf32>
    %68 = vector.multi_reduction <add>, %67, %cst_26 [0] : vector<1x8x128xf32> to vector<8x128xf32>
    %c0_27 = arith.constant 0 : index
    %c0_28 = arith.constant 0 : index
    %c0_29 = arith.constant 0 : index
    %69 = vector.load %arg4[%c0_27, %c0_28, %c0_29] : memref<1x8x128xf32, #tpu.memory_space<vmem>>, vector<1x8x128xf32>
    %70 = vector.shape_cast %69 : vector<1x8x128xf32> to vector<8x128xf32>
    %71 = vector.shape_cast %68 : vector<8x128xf32> to vector<1x8x128xf32>
    tpu.vector_store %arg4[%c0_27, %c0_28, %c0_29], %71 {strides = array<i32>} : memref<1x8x128xf32, #tpu.memory_space<vmem>>, vector<1x8x128xf32>,
    return
  }
  func.func @transform_0(%arg0: i32, %arg1: memref<1xi32, #tpu.memory_space<smem>>) -> (i32, i32, i32) {
    %c0_i32 = arith.constant 0 : i32
    %c0_i32_0 = arith.constant 0 : i32
    %c0_i32_1 = arith.constant 0 : i32
    return %c0_i32, %arg0, %c0_i32_0 : i32, i32, i32
  }
  func.func @transform_1(%arg0: i32, %arg1: memref<1xi32, #tpu.memory_space<smem>>) -> (i32, i32, i32) {
    %c0_i32 = arith.constant 0 : i32
    %c0_i32_0 = arith.constant 0 : i32
    %c0_i32_1 = arith.constant 0 : i32
    return %c0_i32, %arg0, %c0_i32_0 : i32, i32, i32
  }
  func.func @transform_2(%arg0: i32, %arg1: memref<1xi32, #tpu.memory_space<smem>>) -> (i32, i32, i32) {
    %c0_i32 = arith.constant 0 : i32
    %c0_i32_0 = arith.constant 0 : i32
    %c0_i32_1 = arith.constant 0 : i32
    return %arg0, %c0_i32, %c0_i32_0 : i32, i32, i32
  }
}

</mosaic_0001>

<bundles_post_ra>
// kernel: giou_loss_pallas.1
= control target key start
LH: loop header
LB: loop body
LE: loop exit
PB: predicated region body
PF: predicated region fallthrough
CT: control target
= control target key end

     0   :  { %v61_v34 = vlaneseq  ;;  %s139_s1 = inlined_call_operand.vmem [shape: f32[4,8,128], index: 1, kind: input, shape index: {}]   ;;  %s140_s2 = inlined_call_operand.vmem [shape: f32[4,8,128], index: 2, kind: input, shape index: {}]   ;;  %s141_s0 = inlined_call_operand.<no memory space> [shape: s32[1], index: 0, kind: input, shape index: {}]   ;;  %s142_s3 = inlined_call_operand.vmem [shape: f32[1,8,128], index: 3, kind: output, shape index: {}]  }
   0x1   :  { %v13_v0 = vld [vmem:[%s139_s1] sm:$0xff]  ;;  %v79_v1 = vld [vmem:[%s139_s1 + $0x8] sm:$0xff]  ;;  %v80_v2 = vld [vmem:[%s139_s1 + $0x10] sm:$0xff]  ;;  %v70_v44 = vstv %s141_s0 }
   0x2   :  { %v81_v3 = vld [vmem:[%s139_s1 + $0x18] sm:$0xff]  ;;  %v20_v4 = vld [vmem:[%s140_s2] sm:$0xff]  ;;  %v82_v5 = vld [vmem:[%s140_s2 + $0x8] sm:$0xff]  ;;  %v36_v6 = vsub.f32 %v80_v2, %v13_v0  ;;  %v62_v35 = vshrl.u32 %v61_v34, 7  ;;  %v64_v37 = vand.u32 127, %v61_v34 }
   0x3   :  { %v83_v7 = vld [vmem:[%s140_s2 + $0x10] sm:$0xff]  ;;  %v84_v8 = vld [vmem:[%s140_s2 + $0x18] sm:$0xff]  ;;  %v27_v9 = vmax.f32 %v13_v0, %v20_v4  ;;  %v28_v10 = vmax.f32 %v79_v1, %v82_v5  ;;  %v37_v11 = vsub.f32 %v81_v3, %v79_v1  ;;  %v47_v12 = vmin.f32 %v13_v0, %v20_v4 }
   0x4   :  { %v29_v13 = vmin.f32 %v80_v2, %v83_v7  ;;  %v30_v14 = vmin.f32 %v81_v3, %v84_v8  ;;  %v39_v15 = vsub.f32 %v83_v7, %v20_v4  ;;  %v40_v16 = vsub.f32 %v84_v8, %v82_v5 }
   0x5   :  { %v38_v17 = vmul.f32 %v37_v11, %v36_v6  ;;  %v48_v18 = vmin.f32 %v79_v1, %v82_v5  ;;  %v49_v19 = vmax.f32 %v80_v2, %v83_v7  ;;  %v50_v20 = vmax.f32 %v81_v3, %v84_v8 }
   0x6   :  { %v31_v21 = vsub.f32 %v29_v13, %v27_v9  ;;  %v33_v22 = vsub.f32 %v30_v14, %v28_v10  ;;  %v41_v23 = vmul.f32 %v40_v16, %v39_v15  ;;  %v65_v38 = vmul.u32 128, %v62_v35 }
   0x7   :  { %v51_v24 = vsub.f32 %v49_v19, %v47_v12  ;;  %v52_v25 = vsub.f32 %v50_v20, %v48_v18 }
   0x8   :  { %v32_v26 = vmax.f32 %v31_v21, 0.0  ;;  %v34_v27 = vmax.f32 %v33_v22, 0.0  ;;  %v42_v28 = vadd.f32 %v41_v23, %v38_v17  ;;  %v68_v42 = vadd.s32 %v65_v38, %v64_v37 }
   0x9   :  { %v53_v29 = vmul.f32 %v52_v25, %v51_v24 }
   0xa   :  { %v35_v30 = vmul.f32 %v34_v27, %v32_v26  ;;  %vm71_vm0 = vcmp.lt.s32.totalorder %v68_v42, %v70_v44 }
   0xb   :  { %v55_v31 = vadd.f32 1e-07, %v53_v29 }
   0xc   :  { %v43_v32 = vsub.f32 %v42_v28, %v35_v30 }
   0xd   :  { %85 = vrcp.f32 %v55_v31 }
   0xe   :  { %v44_v33 = vadd.f32 1e-07, %v43_v32  ;;  %v54_v36 = vsub.f32 %v53_v29, %v43_v32 }
  0x10   :  { %87 = vrcp.f32 %v44_v33 }
  0x17   :  { %v86_v39 = vpop.eup %85 }
  0x18   :  { %v57_v40 = vmul.f32 %v86_v39, %v54_v36 }
  0x1a   :  { %v88_v41 = vpop.eup %87 }
  0x1b   :  { %v46_v43 = vmul.f32 %v88_v41, %v35_v30 }
  0x1d   :  { %v58_v45 = vsub.f32 %v46_v43, %v57_v40 }
  0x1f   :  { %v59_v46 = vsub.f32 1.0, %v58_v45 }
  0x21   :  { %v72_v47 = vsel %vm71_vm0, %v59_v46, 0.0 }
  0x22   :  { %74 = vst [vmem:[%s142_s3] sm:$0xff] %v72_v47 }

</bundles_post_ra>
